<compile_context>
chip_gen: v7x
topology: tpu7x:2x2x1
jax: 0.10.0
libtpu: 0.0.40
codegen_flags: <defaults>
</compile_context>

<pallas_src>
import jax
import jax.numpy as jnp
from jax.experimental import pallas as pl
from jax.experimental.pallas import tpu as pltpu

EPS = 1e-5  # nn.BatchNorm2d default eps


def _banded_weights(w_oihw, width, dtype):
    """Banded conv weights [3, W*Cin, W*Cout]; B[ky] folds the three kx taps.

    B[ky, x_in*Cin+ci, x_out*Cout+co] = W[co, ci, ky, x_in-x_out+1] for
    |x_in - x_out| <= 1, else 0.  Width 'same' padding is implicit: taps that
    would read outside [0, W) simply have no band entry.
    """
    wk = jnp.transpose(w_oihw, (2, 3, 1, 0))  # [ky, kx, Cin, Cout]
    bands = []
    for ky in range(3):
        b = sum(jnp.kron(jnp.eye(width, k=1 - kx, dtype=w_oihw.dtype), wk[ky, kx])
                for kx in range(3))
        bands.append(b)
    return jnp.stack(bands).astype(dtype)


def _make_conv_stats_kernel(h, w, cout, *, apply_act, pad_out, mxu_dtype):
    """Per-image fused [BN-apply + ReLU ->] conv3x3 -> per-image BN partials."""
    wco = w * cout

    def kernel(*refs):
        if apply_act:
            x_ref, scale_ref, shift_ref, b_ref, conv_ref, stats_ref = refs
        else:
            x_ref, b_ref, conv_ref, stats_ref = refs

        # [H+2, W*Cin] padded-rows slab for one image.
        x = x_ref[0].astype(jnp.float32)
        if apply_act:
            # Fused BN-apply + ReLU of the previous layer (scale/shift are
            # per-lane, i.e. per-(width, channel)).  The two halo rows hold raw
            # zeros; re-zero them because max(0*scale + shift, 0) != 0 in general.
            x = jnp.maximum(x * scale_ref[...] + shift_ref[...], 0.0)
            rid = jax.lax.broadcasted_iota(jnp.int32, (h + 2, 1), 0)
            x = jnp.where((rid >= 1) & (rid <= h), x, 0.0)
        x = x.astype(mxu_dtype)

        # 3x3 conv == 3 banded matmuls, one per ky; LHS is a sublane-shifted
        # view of the same lane-aligned slab (M = H rows per MXU push).
        acc = jnp.zeros((h, wco), jnp.float32)
        for ky in range(3):
            acc = acc + jnp.dot(x[ky:ky + h, :], b_ref[ky],
                                preferred_element_type=jnp.float32)

        if pad_out:
            # Emit directly in the padded-rows layout the next conv consumes.
            zrow = jnp.zeros((1, wco), jnp.float32)
            conv_ref[0] = jnp.concatenate([zrow, acc, zrow],
                                          axis=0).astype(conv_ref.dtype)
        else:
            conv_ref[0] = acc.astype(conv_ref.dtype)

        # Per-image BN partials: row 0 = per-lane sum, row 1 = centered M2
        # (combined across images / width with Chan's formula in the wrapper).
        s = jnp.sum(acc, axis=0, keepdims=True)
        d = acc - s * (1.0 / h)
        q = jnp.sum(d * d, axis=0, keepdims=True)
        stats_ref[0] = jnp.concatenate(
            [s, q, jnp.zeros((6, wco), jnp.float32)], axis=0)

    return kernel


def _conv_stats(x_pad, banded, scale_l=None, shift_l=None, *, h, w, cin, cout,
                apply_act, pad_out, mxu_dtype, store_dtype):
    n = x_pad.shape[0]
    wci, wco = w * cin, w * cout
    kernel = _make_conv_stats_kernel(h, w, cout, apply_act=apply_act,
                                     pad_out=pad_out, mxu_dtype=mxu_dtype)

    in_specs = [pl.BlockSpec((1, h + 2, wci), lambda i: (i, 0, 0))]
    args = [x_pad]
    if apply_act:
        in_specs += [pl.BlockSpec((1, wci), lambda i: (0, 0)),
                     pl.BlockSpec((1, wci), lambda i: (0, 0))]
        args += [scale_l, shift_l]
    # Constant index_map: the pipeliner fetches the banded weights once.
    in_specs.append(pl.BlockSpec((3, wci, wco), lambda i: (0, 0, 0)))
    args.append(banded)

    out_rows = h + 2 if pad_out else h
    conv, stats = pl.pallas_call(
        kernel,
        grid=(n,),
        in_specs=in_specs,
        out_specs=(pl.BlockSpec((1, out_rows, wco), lambda i: (i, 0, 0)),
                   pl.BlockSpec((1, 8, wco), lambda i: (i, 0, 0))),
        out_shape=(jax.ShapeDtypeStruct((n, out_rows, wco), store_dtype),
                   jax.ShapeDtypeStruct((n, 8, wco), jnp.float32)),
        compiler_params=pltpu.CompilerParams(
            dimension_semantics=("parallel",),        # per-image -> 2 TCs on v7x
            vmem_limit_bytes=32 * 1024 * 1024),
    )(*args)
    return conv, stats


def _bn_scale_shift(stats, gamma, beta, *, n, h, w, c):
    """Combine per-image partial (sum, centered M2) into BN scale/shift (f32)."""
    s = stats[:, 0, :].reshape(n, w, c)     # per-(image, width) sums over H rows
    q = stats[:, 1, :].reshape(n, w, c)     # per-(image, width) centered M2 over H rows
    cnt = jnp.float32(h)
    total = jnp.float32(n * h * w)
    mean = jnp.sum(s, axis=(0, 1)) / total
    m_g = s / cnt
    m2 = jnp.sum(q, axis=(0, 1)) + jnp.sum(cnt * jnp.square(m_g - mean), axis=(0, 1))
    var = m2 / total                         # biased variance (PyTorch training BN)
    scale = gamma * jax.lax.rsqrt(var + EPS)
    shift = beta - mean * scale
    scale_l = jnp.tile(scale, (w,)).reshape(1, w * c)
    shift_l = jnp.tile(shift, (w,)).reshape(1, w * c)
    return scale_l, shift_l


def _finish_kernel(x_ref, scale_ref, shift_ref, o_ref):
    """Final BN-apply + ReLU: one lane-dense FMA + max per element."""
    o_ref[...] = jnp.maximum(
        x_ref[...].astype(jnp.float32) * scale_ref[...] + shift_ref[...],
        0.0).astype(o_ref.dtype)


def _bn_relu(x2d, scale_l, shift_l):
    rows, wc = x2d.shape
    block_rows = rows                        # mem-bound FMA+ReLU: biggest slab that fits
    for cand in (2048, 1024, 512):
        if rows > cand and rows % cand == 0:
            block_rows = cand
            break
    return pl.pallas_call(
        _finish_kernel,
        grid=(rows // block_rows,),
        in_specs=[pl.BlockSpec((block_rows, wc), lambda i: (i, 0)),
                  pl.BlockSpec((1, wc), lambda i: (0, 0)),
                  pl.BlockSpec((1, wc), lambda i: (0, 0))],
        out_specs=pl.BlockSpec((block_rows, wc), lambda i: (i, 0)),
        out_shape=jax.ShapeDtypeStruct((rows, wc), jnp.float32),
        compiler_params=pltpu.CompilerParams(
            dimension_semantics=("parallel",),
            vmem_limit_bytes=32 * 1024 * 1024),
    )(x2d, scale_l, shift_l)


def vgg_block(x_nchw, params, *, mxu_dtype=jnp.bfloat16, store_dtype=None):
    if store_dtype is None:
        store_dtype = jnp.bfloat16 if mxu_dtype == jnp.bfloat16 else jnp.float32
    n, cin, h, w = x_nchw.shape
    cmid = params["w1"].shape[0]
    cout = params["w2"].shape[0]

    # NCHW -> lane-dense NHWC rows [N, H, W*Cin]; height-only zero padding (the
    # width 'same' padding lives in the banded weights).
    x = jnp.transpose(x_nchw, (0, 2, 3, 1)).reshape(n, h, w * cin)
    x_pad = jnp.pad(x, ((0, 0), (1, 1), (0, 0)))

    b1 = _banded_weights(params["w1"], w, mxu_dtype)
    b2 = _banded_weights(params["w2"], w, mxu_dtype)

    # Layer 1: conv1 + per-image BN1 partials; raw output written directly in
    # the padded-rows layout consumed by layer 2.
    conv1, stats1 = _conv_stats(x_pad, b1, h=h, w=w, cin=cin, cout=cmid,
                                apply_act=False, pad_out=True,
                                mxu_dtype=mxu_dtype, store_dtype=store_dtype)
    scale1, shift1 = _bn_scale_shift(stats1, params["g1"], params["be1"],
                                     n=n, h=h, w=w, c=cmid)

    # Layer 2: fused BN1-apply + ReLU + conv2 + per-image BN2 partials.
    conv2, stats2 = _conv_stats(conv1, b2, scale1, shift1, h=h, w=w, cin=cmid,
                                cout=cout, apply_act=True, pad_out=False,
                                mxu_dtype=mxu_dtype, store_dtype=store_dtype)
    scale2, shift2 = _bn_scale_shift(stats2, params["g2"], params["be2"],
                                     n=n, h=h, w=w, c=cout)

    # Final BN2-apply + ReLU over large lane-dense tiles, then back to NCHW.
    y = _bn_relu(conv2.reshape(n * h, w * cout), scale2, shift2)
    y = y.reshape(n, h, w, cout)
    # TODO(synk): BatchNorm running_mean/running_var buffer updates (training
    # side effect that does not affect the forward output) are not produced.
    # TODO(synk): for large H*W*C where one padded image exceeds the VMEM
    # budget, re-introduce row tiling (TH < H) inside the per-image grid step.
    return jnp.transpose(y, (0, 3, 1, 2))


def _ref_forward(x, params):
    """Pure-JAX reference mirroring the PyTorch forward (training-mode BN, with bias)."""
    def conv(x, w, b):
        y = jax.lax.conv_general_dilated(
            x, w, window_strides=(1, 1), padding=((1, 1), (1, 1)),
            dimension_numbers=("NCHW", "OIHW", "NCHW"))
        return y + b[None, :, None, None]

    def bn(x, g, be):
        mean = jnp.mean(x, axis=(0, 2, 3), keepdims=True)
        var = jnp.mean(jnp.square(x - mean), axis=(0, 2, 3), keepdims=True)
        return (x - mean) * jax.lax.rsqrt(var + EPS) \
            * g[None, :, None, None] + be[None, :, None, None]

    y = jnp.maximum(bn(conv(x, params["w1"], params["b1"]),
                       params["g1"], params["be1"]), 0.0)
    y = jnp.maximum(bn(conv(y, params["w2"], params["b2"]),
                       params["g2"], params["be2"]), 0.0)
    return y


if __name__ == "__main__":
    # Small shapes consistent with the module: batch=2, in=4, mid=8, out=8, spatial=16.
    N, CIN, CMID, COUT, H, W = 2, 4, 8, 8, 16, 16

    key = jax.random.PRNGKey(0)
    k_x, k_w1, k_b1, k_w2, k_b2 = jax.random.split(key, 5)

    x = jax.random.normal(k_x, (N, CIN, H, W), dtype=jnp.float32)

    params = {
        # Conv2d weights [Cout, Cin, 3, 3] + bias [Cout] (bias cancels under training BN)
        "w1": jax.random.normal(k_w1, (CMID, CIN, 3, 3), jnp.float32) * 0.1,
        "b1": jax.random.normal(k_b1, (CMID,), jnp.float32) * 0.1,
        "w2": jax.random.normal(k_w2, (COUT, CMID, 3, 3), jnp.float32) * 0.1,
        "b2": jax.random.normal(k_b2, (COUT,), jnp.float32) * 0.1,
        # BatchNorm2d affine params: PyTorch default init (gamma=1, beta=0)
        "g1": jnp.ones((CMID,), jnp.float32),
        "be1": jnp.zeros((CMID,), jnp.float32),
        "g2": jnp.ones((COUT,), jnp.float32),
        "be2": jnp.zeros((COUT,), jnp.float32),
    }

    ref = jax.block_until_ready(_ref_forward(x, params))

    # Exact-structure path (f32 MXU operands, f32 intermediates).
    out_f32 = jax.block_until_ready(vgg_block(x, params, mxu_dtype=jnp.float32))
    assert out_f32.shape == (N, COUT, H, W), out_f32.shape
    assert jnp.allclose(out_f32, ref, atol=1e-4, rtol=1e-4), \
        float(jnp.max(jnp.abs(out_f32 - ref)))

    # Fast path (bf16 MXU operands + bf16 intermediates, f32 accumulation and
    # f32 BN statistics) — the recommended default on v5e/v6e/v7x.
    out_bf16 = jax.block_until_ready(vgg_block(x, params, mxu_dtype=jnp.bfloat16))
    assert out_bf16.shape == (N, COUT, H, W), out_bf16.shape
    assert jnp.allclose(out_bf16, ref, atol=5e-2, rtol=5e-2), \
        float(jnp.max(jnp.abs(out_bf16 - ref)))

    print("KERNEL_OK")
</pallas_src>

<mosaic_0001>
module attributes {stable_mosaic.version = 11 : i64} {
  func.func @kernel(%arg0: i32, %arg1: memref<1x18x64xf32, #tpu.memory_space<vmem>>, %arg2: memref<3x64x128xf32, #tpu.memory_space<vmem>>, %arg3: memref<1x18x128xf32, #tpu.memory_space<vmem>>, %arg4: memref<1x8x128xf32, #tpu.memory_space<vmem>>) attributes {dimension_semantics = [#tpu.dimension_semantics<parallel>], iteration_bounds = array<i64: 2>, scalar_prefetch = 0 : i64, scratch_operands = 0 : i64, tpu.core_type = #tpu.core_type<tc>, window_params = [{transform_indices = @transform_0, window_bounds = array<i64: 1, 18, 64>}, {pipeline_mode = #tpu.pipeline_mode<synchronous>, transform_indices = @transform_1, window_bounds = array<i64: 3, 64, 128>}, {transform_indices = @transform_2, window_bounds = array<i64: 1, 18, 128>}, {transform_indices = @transform_3, window_bounds = array<i64: 1, 8, 128>}]} {
    %c0 = arith.constant 0 : index
    %c0_0 = arith.constant 0 : index
    %c0_1 = arith.constant 0 : index
    %0 = vector.load %arg1[%c0, %c0_0, %c0_1] : memref<1x18x64xf32, #tpu.memory_space<vmem>>, vector<1x18x64xf32>
    %1 = vector.shape_cast %0 : vector<1x18x64xf32> to vector<18x64xf32>
    %cst = arith.constant 0.000000e+00 : f32
    %2 = vector.broadcast %cst : f32 to vector<16x128xf32>
    %3 = vector.extract_strided_slice %1 {offsets = [0, 0], sizes = [16, 64], strides = [1, 1]} : vector<18x64xf32> to vector<16x64xf32>
    %c0_2 = arith.constant 0 : index
    %c0_3 = arith.constant 0 : index
    %c0_4 = arith.constant 0 : index
    %4 = vector.load %arg2[%c0_2, %c0_3, %c0_4] : memref<3x64x128xf32, #tpu.memory_space<vmem>>, vector<1x64x128xf32>
    %5 = vector.shape_cast %4 : vector<1x64x128xf32> to vector<64x128xf32>
    %cst_5 = arith.constant dense<0.000000e+00> : vector<16x128xf32>
    %6 = tpu.matmul %3, %5, %cst_5 {dimension_numbers = #tpu.dot_dimension_numbers<[1], [0], [0], [1], [0, 0, 1, 1], [], []>} : vector<16x64xf32>, vector<64x128xf32>, vector<16x128xf32> -> vector<16x128xf32>
    %7 = arith.addf %2, %6 : vector<16x128xf32>
    %8 = vector.extract_strided_slice %1 {offsets = [1, 0], sizes = [16, 64], strides = [1, 1]} : vector<18x64xf32> to vector<16x64xf32>
    %c1 = arith.constant 1 : index
    %c0_6 = arith.constant 0 : index
    %c0_7 = arith.constant 0 : index
    %9 = vector.load %arg2[%c1, %c0_6, %c0_7] : memref<3x64x128xf32, #tpu.memory_space<vmem>>, vector<1x64x128xf32>
    %10 = vector.shape_cast %9 : vector<1x64x128xf32> to vector<64x128xf32>
    %cst_8 = arith.constant dense<0.000000e+00> : vector<16x128xf32>
    %11 = tpu.matmul %8, %10, %cst_8 {dimension_numbers = #tpu.dot_dimension_numbers<[1], [0], [0], [1], [0, 0, 1, 1], [], []>} : vector<16x64xf32>, vector<64x128xf32>, vector<16x128xf32> -> vector<16x128xf32>
    %12 = arith.addf %7, %11 : vector<16x128xf32>
    %13 = vector.extract_strided_slice %1 {offsets = [2, 0], sizes = [16, 64], strides = [1, 1]} : vector<18x64xf32> to vector<16x64xf32>
    %c2 = arith.constant 2 : index
    %c0_9 = arith.constant 0 : index
    %c0_10 = arith.constant 0 : index
    %14 = vector.load %arg2[%c2, %c0_9, %c0_10] : memref<3x64x128xf32, #tpu.memory_space<vmem>>, vector<1x64x128xf32>
    %15 = vector.shape_cast %14 : vector<1x64x128xf32> to vector<64x128xf32>
    %cst_11 = arith.constant dense<0.000000e+00> : vector<16x128xf32>
    %16 = tpu.matmul %13, %15, %cst_11 {dimension_numbers = #tpu.dot_dimension_numbers<[1], [0], [0], [1], [0, 0, 1, 1], [], []>} : vector<16x64xf32>, vector<64x128xf32>, vector<16x128xf32> -> vector<16x128xf32>
    %17 = arith.addf %12, %16 : vector<16x128xf32>
    %cst_12 = arith.constant 0.000000e+00 : f32
    %18 = vector.broadcast %cst_12 : f32 to vector<1x128xf32>
    %19 = tpu.concatenate %18, %17, %18 in 0 : vector<1x128xf32>, vector<16x128xf32>, vector<1x128xf32> -> vector<18x128xf32>
    %c0_13 = arith.constant 0 : index
    %c0_14 = arith.constant 0 : index
    %c0_15 = arith.constant 0 : index
    %20 = vector.load %arg3[%c0_13, %c0_14, %c0_15] : memref<1x18x128xf32, #tpu.memory_space<vmem>>, vector<1x18x128xf32>
    %21 = vector.shape_cast %20 : vector<1x18x128xf32> to vector<18x128xf32>
    %22 = vector.shape_cast %19 : vector<18x128xf32> to vector<1x18x128xf32>
    tpu.vector_store %arg3[%c0_13, %c0_14, %c0_15], %22 {strides = array<i32>} : memref<1x18x128xf32, #tpu.memory_space<vmem>>, vector<1x18x128xf32>,
    %cst_16 = arith.constant dense<0.000000e+00> : vector<128xf32>
    %23 = vector.multi_reduction <add>, %17, %cst_16 [0] : vector<16x128xf32> to vector<128xf32>
    %24 = vector.shape_cast %23 : vector<128xf32> to vector<1x128xf32>
    %cst_17 = arith.constant 6.250000e-02 : f32
    %25 = vector.broadcast %cst_17 : f32 to vector<1x128xf32>
    %26 = arith.mulf %24, %25 : vector<1x128xf32>
    %27 = vector.broadcast %26 : vector<1x128xf32> to vector<16x128xf32>
    %28 = arith.subf %17, %27 : vector<16x128xf32>
    %29 = arith.mulf %28, %28 : vector<16x128xf32>
    %cst_18 = arith.constant dense<0.000000e+00> : vector<128xf32>
    %30 = vector.multi_reduction <add>, %29, %cst_18 [0] : vector<16x128xf32> to vector<128xf32>
    %31 = vector.shape_cast %30 : vector<128xf32> to vector<1x128xf32>
    %cst_19 = arith.constant 0.000000e+00 : f32
    %32 = vector.broadcast %cst_19 : f32 to vector<6x128xf32>
    %33 = tpu.concatenate %24, %31, %32 in 0 : vector<1x128xf32>, vector<1x128xf32>, vector<6x128xf32> -> vector<8x128xf32>
    %c0_20 = arith.constant 0 : index
    %c0_21 = arith.constant 0 : index
    %c0_22 = arith.constant 0 : index
    %34 = vector.load %arg4[%c0_20, %c0_21, %c0_22] : memref<1x8x128xf32, #tpu.memory_space<vmem>>, vector<1x8x128xf32>
    %35 = vector.shape_cast %34 : vector<1x8x128xf32> to vector<8x128xf32>
    %36 = vector.shape_cast %33 : vector<8x128xf32> to vector<1x8x128xf32>
    tpu.vector_store %arg4[%c0_20, %c0_21, %c0_22], %36 {strides = array<i32>} : memref<1x8x128xf32, #tpu.memory_space<vmem>>, vector<1x8x128xf32>,
    return
  }
  func.func @transform_0(%arg0: i32) -> (i32, i32, i32) {
    %c0_i32 = arith.constant 0 : i32
    %c0_i32_0 = arith.constant 0 : i32
    %c0_i32_1 = arith.constant 0 : i32
    return %arg0, %c0_i32, %c0_i32_0 : i32, i32, i32
  }
  func.func @transform_1(%arg0: i32) -> (i32, i32, i32) {
    %c0_i32 = arith.constant 0 : i32
    %c0_i32_0 = arith.constant 0 : i32
    %c0_i32_1 = arith.constant 0 : i32
    %c0_i32_2 = arith.constant 0 : i32
    return %c0_i32, %c0_i32_0, %c0_i32_1 : i32, i32, i32
  }
  func.func @transform_2(%arg0: i32) -> (i32, i32, i32) {
    %c0_i32 = arith.constant 0 : i32
    %c0_i32_0 = arith.constant 0 : i32
    %c0_i32_1 = arith.constant 0 : i32
    return %arg0, %c0_i32, %c0_i32_0 : i32, i32, i32
  }
  func.func @transform_3(%arg0: i32) -> (i32, i32, i32) {
    %c0_i32 = arith.constant 0 : i32
    %c0_i32_0 = arith.constant 0 : i32
    %c0_i32_1 = arith.constant 0 : i32
    return %arg0, %c0_i32, %c0_i32_0 : i32, i32, i32
  }
}

</mosaic_0001>

<bundles_post_ra>
// kernel: tpu_custom_call.1
= control target key start
LH: loop header
LB: loop body
LE: loop exit
PB: predicated region body
PF: predicated region fallthrough
CT: control target
= control target key end

     0   :  { %9 = vsyncpa [#allocation3], 0  ;;  %s1136_s0 = inlined_call_operand.vmem [shape: f32[2,18,64], index: 0, kind: input, shape index: {}]   ;;  %s1137_s1 = inlined_call_operand.hbm [shape: f32[3,64,128], index: 1, kind: input, shape index: {}]   ;;  %s1138_s2 = inlined_call_operand.vmem [shape: f32[2,18,128], index: 2, kind: output, shape index: {0}]   ;;  %s1139_s3 = inlined_call_operand.hbm [shape: f32[2,8,128], index: 3, kind: output, shape index: {1}]  }
   0x1   :  { %10 = vsyncpa [#allocation4], 0 }
   0x2   :  { %12 = vsyncpa [#allocation4 + $0x1], 0  ;;  %s967_s12 = smov 0   ;;  %s969_s13 = smov 0  }
   0x3   :  { %s971_s14 = smov 0   ;;  %s973_s15 = smov 0  }
   0x4 LB: > { %s988_s16 = sadd.s32 4294967295, %s941_s15   ;;  %s636_s17 = sadd.s32 4294967294, %s941_s15   ;;  %s941_s15 = sphi %s973_s15, %s1155_s15   ;;  %s937_s14 = sphi %s971_s14, %s1154_s14   ;;  %s933_s13 = sphi %s969_s13, %s1153_s13   ;;  %s929_s12 = sphi %s967_s12, %s1152_s12  }
   0x5   : > { %s992_s18 = sadd.s32 1, %s941_s15   ;;  %s98_s19 = sadd.s32 1, %s937_s14 }
   0x6   : > { %s95_s20 = ssub.s32 %s941_s15, %s992_s18  ;;  %p108_p0 = scmp.ne.s32.totalorder %s937_s14, %s933_s13 }
   0x7   : > { %p96_p1 = scmp.eq.s32.totalorder %s95_s20, 0  ;;  %p109_p2 = scmp.eq.s32.totalorder %s988_s16, 1 }
   0x8   : > { %p114_p3 = scmp.ne.s32.totalorder %s933_s13, %s929_s12  ;;  %p115_p4 = scmp.eq.s32.totalorder %s636_s17, 1 }
   0x9   : > { %s1003_s21 = scalar_select %p96_p1, %s937_s14, %s98_s19  }
   0xa   : > { %p1005_p5 = por %p109_p2, %p108_p0  ;;  %p1009_p6 = por %p115_p4, %p114_p3 }
   0xb   : > { %p637_p7 = scmp.ge.s32.totalorder %s941_s15, 1  ;;  %p122_p8 = scmp.lt.s32.totalorder %s941_s15, 3 }
   0xc   : > { %s1143_s22 = scalar_select %p1005_p5, 1, 0 }
   0xd   : > { %s1144_s23 = scalar_select %p1009_p6, 1, 0 }
   0xe   : > { %p1140_p9 = scmp.eq.s32.totalorder %s988_s16, 0  ;;  %p1016_p10 = pnand %p637_p7, %p122_p8 }
   0xf   : > { %s943_s25 = smov [#allocation2]   ;;  %s847_s30 = scalar_lea.hbm %s1137_s1, 3072 }
  0x10   : > { %s1145_s24 = scalar_select %p1016_p10, 1, 0 }
  0x11   : > { %s134_s26 = sshll.u32 %s943_s25, 4  ;;  %p801_p11 = pneg %p1016_p10  ;;  %s135_s26 = int_to_ptr.vmem [resolvable:$true] %s134_s26 }
  0x12   : > { %p848_p13 = scmp.ne.s32.totalorder %s1137_s1, %s847_s30  ;;  %p854_p3 = scmp.lt.u32.totalorder %s847_s30, %s1137_s1 }
  0x13   : > { %p1024_p12 = pnand %p1140_p9, %p801_p11 }
  0x15   : > { %p849_p0 = pneg %p1024_p12 }
  0x17   : > { %p850_p1 = pnand %p849_p0, %p848_p13 }
  0x19   : > { %p851_p2 = pneg %p850_p1 }
  0x1b   : > { %p856_p4 = pnand %p854_p3, %p851_p2 }
  0x1d   : > { %859 = shalt.err (!%p856_p4)
}
  0x1e   : > { %s860_s8 = scalar_lea.vmem %s135_s26, 3072  ;;  %p868_p9 = scmp.lt.s32.totalorder %s135_s26, %s135_s26 }
  0x1f   : > { %p861_p7 = scmp.ne.s32.totalorder %s135_s26, %s860_s8  ;;  %p869_p6 = scmp.lt.s32.totalorder %s860_s8, %s860_s8 }
  0x21   : > { %p863_p8 = pnand %p861_p7, %p849_p0  ;;  %p870_p5 = por %p869_p6, %p868_p9 }
  0x23   : > { %p864_p11 = pneg %p863_p8 }
  0x25   : > { %p871_p10 = pnand %p870_p5, %p864_p11 }
  0x27   : > { %874 = shalt.err (!%p871_p10)
}
  0x28   : > { %s944_s9 = smov 128   ;;  %s945_s10 = smov 8  }
  0x29   : > { %804 = dma.hbm_to_vmem [thread:$0]  (!%p1024_p12), %s1137_s1, 3072, %s135_s26, [#allocation3], %s944_s9, %s944_s9, %s945_s10  }
  0x2a   : > { %p1147_p13 = scmp.ne.s32.totalorder %s1145_s24, 0 }
  0x2b   : > { %p1148_p1 = scmp.eq.s32.totalorder (!%p1147_p13), %s988_s16, 0 }
  0x2c   : > { %158 = sbr.rel (%p1147_p13) target bundleno = 352 (0x160), region = 28 }
  0x33   : > { %920 = dma.done.wait (%p1148_p1), [#allocation3], 3072   ;;  %p1149_p0 = pmov %p1148_p1 }
  0x34   : > { %p187_p5 = scmp.lt.s32.totalorder %s988_s16, 1  ;;  %v200_v0 = vld [vmem:[#allocation2] sm:$0xff]  ;;  %v201_v1 = vld [vmem:[#allocation2 + $0x8] sm:$0xff]  ;;  %v202_v2 = vld [vmem:[#allocation2 + $0x10] sm:$0xff]  ;;  %vm226_vm0 = vcmask 523264   ;;  %vm220_vm1 = vcmask 1046528  }
  0x35   : > { %922 = vsyncadd (%p1149_p0), [#allocation3], 4294964224  ;;  %v758_v3 = vpack.c.bf16 %v201_v1, %v200_v0  ;;  %v203_v4 = vld [vmem:[#allocation2 + $0x18] sm:$0xff]  ;;  %v204_v6 = vld [vmem:[#allocation2 + $0x20] sm:$0xff]  ;;  %vm394_vm2 = vcmask 1045504   ;;  %vm483_vm3 = vcmask 1040384  }
  0x36   : > { %s1052_s19 = scalar_select %p187_p5, %s988_s16, 1  ;;  %v762_v5 = vpack.c.bf16 %v203_v4, %v202_v2  ;;  %v205_v7 = vld [vmem:[#allocation2 + $0x28] sm:$0xff]  ;;  %v209_v8 = vld [vmem:[#allocation2 + $0x40] sm:$0xff]  ;;  %v206_v15 = vld [vmem:[#allocation2 + $0x30] sm:$0xff]  ;;  %vm515_vm4 = vcmask 1041408  }
  0x37   : > { %759 = vmatprep.subr.bf16.mxu0 %v758_v3  ;;  %v210_v9 = vld [vmem:[#allocation2 + $0x48] sm:$0xff]  ;;  %v766_v14 = vpack.c.bf16 %v205_v7, %v204_v6  ;;  %v211_v16 = vld [vmem:[#allocation2 + $0x50] sm:$0xff]  ;;  %v212_v17 = vld [vmem:[#allocation2 + $0x58] sm:$0xff]  ;;  %s184_s30 = sand.u32 1, %s933_s13   ;;  %s652_s5 = sshll.u32 %s988_s16, 7 }
  0x38   : > { %s794_s20 = smul.u32 24, %s1052_s19  ;;  %761 = vmatpush3.bf16.msra.mxu0 %v758_v3  ;;  %v742_v11 = vpack.c.bf16 %v210_v9, %v209_v8  ;;  %v207_v19 = vld [vmem:[#allocation2 + $0x38] sm:$0xff]  ;;  %v746_v20 = vpack.c.bf16 %v212_v17, %v211_v16  ;;  %v213_v21 = vld [vmem:[#allocation2 + $0x60] sm:$0xff]  ;;  %v214_v22 = vld [vmem:[#allocation2 + $0x68] sm:$0xff]  ;;  %s642_s4 = sshll.u32 %s184_s30, 3 }
  0x39   : > { %763 = vmatprep.subr.bf16.mxu0 %v762_v5  ;;  %v750_v24 = vpack.c.bf16 %v214_v22, %v213_v21  ;;  %v770_v25 = vpack.c.bf16 %v207_v19, %v206_v15  ;;  %v215_v26 = vld [vmem:[#allocation2 + $0x70] sm:$0xff]  ;;  %v216_v27 = vld [vmem:[#allocation2 + $0x78] sm:$0xff]  ;;  %v386_v28 = vld [vmem:[#allocation2 + $0x80] sm:$0xff]  ;;  %s186_s6 = scalar_lea.vmem [#allocation5], %s642_s4  ;;  %s1094_s10 = scalar_lea.hbm %s1139_s3, %s652_s5 }
  0x3a   : > { %s1060_s26 = scalar_lea.vmem %s1136_s0, %s794_s20  ;;  %743 = vmatprep.subr.bf16.mxu1 %v742_v11  ;;  %v387_v29 = vld [vmem:[#allocation2 + $0x88] sm:$0xff]  ;;  %v754_v31 = vpack.c.bf16 %v216_v27, %v215_v26  ;;  %v388_v35 = vld [vmem:[#allocation2 + $0x90] sm:$0xff]  ;;  %v389_v36 = vld [vmem:[#allocation2 + $0x98] sm:$0xff]  ;;  %s196_s29 = scalar_lea.vmem %s1138_s2, %s794_s20 }
  0x3b   : > { %v197_v10 = vld [vmem:[%s1060_s26] sm:$0xff]  ;;  %v1065_v13 = vld [vmem:[%s1060_s26 + $0x8] sm:$0xff]  ;;  %745 = vmatpush3.bf16.msra.mxu1 %v742_v11  ;;  %v199_v30 = vld [vmem:[%s1060_s26 + $0x10] sm:$0x3]  ;;  %v774_v33 = vpack.c.bf16 %v387_v29, %v386_v28  ;;  %v778_v38 = vpack.c.bf16 %v389_v36, %v388_v35  ;;  %s540_s7 = sshll.u32 %s186_s6, 4  ;;  %s524_s11 = scalar_lea.sflag [#allocation4], %s184_s30  ;;  %s1096_s7 = int_to_ptr.vmem [resolvable:$true] %s540_s7 }
  0x3c   : > { %v221_v12 = vrot.slane %v197_v10, 1  ;;  %720 = vmatprep.mubr.msk.f32.mxu0 %vm226_vm0, %v197_v10  ;;  %v222_v18 = vrot.slane %v1065_v13, 1  ;;  %765 = vmatpush3.bf16.msra.mxu0 %v762_v5  ;;  %v395_v32 = vrot.slane %v197_v10, 2  ;;  %v396_v34 = vrot.slane %v1065_v13, 2  ;;  %v390_v40 = vld [vmem:[#allocation2 + $0xa0] sm:$0xff]  ;;  %v391_v41 = vld [vmem:[#allocation2 + $0xa8] sm:$0xff] }
  0x3d   : > { %747 = vmatprep.subr.bf16.mxu1 %v746_v20  ;;  %767 = vmatprep.subr.bf16.mxu0 %v766_v14  ;;  %v224_v37 = vrot.slane %v199_v30, 1  ;;  %v782_v43 = vpack.c.bf16 %v391_v41, %v390_v40  ;;  %v392_v44 = vld [vmem:[#allocation2 + $0xb0] sm:$0xff]  ;;  %v393_v45 = vld [vmem:[#allocation2 + $0xb8] sm:$0xff]  ;;  %v398_v47 = vrot.slane %v199_v30, 2  ;;  %s875_s16 = scalar_lea.vmem %s1096_s7, 128  ;;  %p1150_p9 = scmp.ne.s32.totalorder %s1143_s22, 0 }
  0x3e   : > { %v223_v23 = vsel %vm220_vm1, %v221_v12, %v222_v18  ;;  %v397_v39 = vsel %vm394_vm2, %v395_v32, %v396_v34  ;;  %v786_v46 = vpack.c.bf16 %v393_v45, %v392_v44  ;;  %p876_p6 = scmp.ne.s32.totalorder %s1096_s7, %s875_s16  ;;  %s946_s17 = smov [#allocation5]  }
  0x3f   : > { %701 = vmatprep.mubr.msk.f32.mxu1 %vm226_vm0, %v223_v23  ;;  %749 = vmatpush3.bf16.msra.mxu1 %v746_v20  ;;  %v225_v42 = vsel %vm220_vm1, %v222_v18, %v224_v37  ;;  %v399_v48 = vsel %vm394_vm2, %v396_v34, %v398_v47  ;;  %s879_s19 = sshll.u32 %s946_s17, 4  ;;  %s880_s19 = int_to_ptr.vmem [resolvable:$false] %s879_s19 }
  0x40   : > { %769 = vmatpush3.bf16.msra.mxu0 %v766_v14  ;;  %751 = vmatprep.subr.bf16.mxu1 %v750_v24  ;;  %p877_p10 = pnand %p876_p6, %p1150_p9  ;;  %s881_s20 = scalar_lea.vmem %s880_s19, 256 }
  0x41   : > { %771 = vmatprep.subr.bf16.mxu0 %v770_v25  ;;  %p882_p2 = scmp.lt.s32.totalorder %s1096_s7, %s880_s19  ;;  %p883_p3 = scmp.lt.s32.totalorder %s881_s20, %s875_s16 }
  0x42   : > { %p878_p12 = pneg %p877_p10 }
  0x43   : > { %753 = vmatpush3.bf16.msra.mxu1 %v750_v24  ;;  %p884_p4 = por %p883_p3, %p882_p2 }
  0x44   : > { %773 = vmatpush3.bf16.msra.mxu0 %v770_v25  ;;  %755 = vmatprep.subr.bf16.mxu1 %v754_v31 }
  0x45   : > { %775 = vmatprep.subr.bf16.mxu0 %v774_v33  ;;  %p885_p7 = pnand %p884_p4, %p878_p12 }
  0x47   : > { %721 = vmatmul.mubr.msk.f32.vlgmr.msra.gmra.mrb[0].mxu0 %vm226_vm0, %v1065_v13  ;;  %757 = vmatpush3.bf16.msra.mxu1 %v754_v31 }
  0x48   : > { %777 = vmatpush3.bf16.msra.mxu0 %v774_v33  ;;  %739 = vmatprep.mubr.msk.f32.mxu0 %vm226_vm0, %v397_v39 }
  0x49   : > { %779 = vmatprep.subr.bf16.mxu0 %v778_v38 }
  0x4a   : > { %702 = vmatmul.mubr.msk.f32.vlgmr.msra.gmra.mrb[0].mxu1 %vm226_vm0, %v225_v42 }
  0x4c   : > { %781 = vmatpush3.bf16.msra.mxu0 %v778_v38 }
  0x4d   : > { %783 = vmatprep.subr.bf16.mxu0 %v782_v43 }
  0x50   : > { %785 = vmatpush3.bf16.msra.mxu0 %v782_v43 }
  0x51   : > { %787 = vmatprep.subr.bf16.mxu0 %v786_v46 }
  0x54   : > { %789 = vmatpush3.bf16.msra.mxu0 %v786_v46 }
  0x57   : > { %740 = vmatmul.mubr.msk.f32.vlgmr.msra.gmra.mrb[0].mxu0 %vm226_vm0, %v399_v48 }
 0x11d   : > { %v703_v49 = vpop.f32.mrb[0].mxu1 }
 0x11e   : > { %v297_v50 = vpop.f32.mrb[1].mxu1 }
 0x12a   : > { %v741_v51 = vpop.f32.mrb[0].mxu0 }
 0x12b   : > { %v790_v52 = vadd.f32 %v741_v51, %v703_v49  ;;  %v470_v53 = vpop.f32.mrb[1].mxu0 }
 0x12c   : > { %v791_v54 = vadd.f32 %v470_v53, %v297_v50 }
 0x12d   : > { %v485_v55 = vrot.slane %v790_v52, 7 }
 0x12e   : > { %v484_v56 = vrot.slane %v791_v54, 7  ;;  %v495_v57 = vadd.f32 %v791_v54, %v790_v52 }
 0x12f   : > { %v491_v58 = vsel %vm483_vm3, %v485_v55, 0.0 }
 0x130   : > { %494 = vst [vmem:[%s196_s29 + $0x10] sm:$0x3] %v491_v58  ;;  %v486_v59 = vsel %vm483_vm3, %v484_v56, %v485_v55  ;;  %v490_v60 = vsel %vm483_vm3, 0.0, %v484_v56  ;;  %v496_v61 = vrot.slane %v495_v57, 4 }
 0x131   : > { %492 = vst [vmem:[%s196_s29] sm:$0xff] %v490_v60  ;;  %493 = vst [vmem:[%s196_s29 + $0x8] sm:$0xff] %v486_v59 }
 0x132   : > { %v497_v62 = vadd.f32 %v496_v61, %v495_v57 }
 0x134   : > { %v498_v63 = vrot.slane %v497_v62, 2 }
 0x136   : > { %v499_v0 = vadd.f32 %v498_v63, %v497_v62 }
 0x138   : > { %v500_v1 = vrot.slane %v499_v0, 1 }
 0x13a   : > { %v501_v2 = vadd.f32 %v500_v1, %v499_v0 }
 0x13c   : > { %v502_v3 = vmul.f32 0.0625, %v501_v2 }
 0x13e   : > { %v503_v4 = vsub.f32 %v791_v54, %v502_v3  ;;  %v504_v5 = vsub.f32 %v790_v52, %v502_v3 }
 0x140   : > { %v505_v6 = vmul.f32 %v503_v4, %v503_v4  ;;  %v506_v7 = vmul.f32 %v504_v5, %v504_v5 }
 0x142   : > { %v507_v8 = vadd.f32 %v506_v7, %v505_v6 }
 0x144   : > { %v508_v9 = vrot.slane %v507_v8, 4 }
 0x146   : > { %v509_v10 = vadd.f32 %v508_v9, %v507_v8 }
 0x148   : > { %v510_v11 = vrot.slane %v509_v10, 2 }
 0x14a   : > { %v511_v12 = vadd.f32 %v510_v11, %v509_v10 }
 0x14c   : > { %v512_v13 = vrot.slane %v511_v12, 1 }
 0x14e   : > { %v513_v14 = vadd.f32 %v512_v13, %v511_v12 }
 0x150   : > { %v514_v15 = vsel %vm483_vm3, %v501_v2, %v513_v14 }
 0x151   : > { %v516_v16 = vsel %vm515_vm4, %v514_v15, 0.0 }
 0x152   : > { %517 = vst [vmem:[%s186_s6] sm:$0xff] %v516_v16 }
 0x153   : > { %888 = shalt.err (!%p885_p7)
}
 0x154   : > { %s889_s24 = scalar_lea.hbm %s1094_s10, 128  ;;  %s893_s27 = scalar_lea.hbm %s1139_s3, 256 }
 0x155   : > { %p890_p8 = scmp.ne.s32.totalorder %s1094_s10, %s889_s24  ;;  %p894_p1 = scmp.lt.u32.totalorder %s1094_s10, %s1139_s3 }
 0x156   : > { %p895_p0 = scmp.lt.u32.totalorder %s893_s27, %s889_s24  ;;  %p897_p6 = scmp.lt.u32.totalorder %s889_s24, %s1094_s10 }
 0x157   : > { %p891_p11 = pnand %p890_p8, %p1150_p9 }
 0x158   : > { %p896_p5 = por %p895_p0, %p894_p1 }
 0x159   : > { %p892_p13 = pneg %p891_p11 }
 0x15a   : > { %p898_p10 = por %p897_p6, %p896_p5 }
 0x15c   : > { %p899_p12 = pnand %p898_p10, %p892_p13 }
 0x15e   : > { %902 = shalt.err (!%p899_p12)
}
 0x15f   : > { %799 = dma.vmem_to_hbm [thread:$0]  (%p1150_p9), %s1096_s7, 128, %s1094_s10, %s524_s11  }
 0x160 PF: > { %p811_p2 = scmp.ge.s32.totalorder %s941_s15, 2  ;;  %s560_s30 = sand.u32 1, %s929_s12  }
 0x161   : > { %p1151_p3 = scmp.ne.s32.totalorder %s1144_s23, 0  ;;  %s561_s4 = scalar_lea.sflag [#allocation4], %s560_s30 }
 0x163   : > { %p806_p4 = pnand %p811_p2, %p1151_p3 }
 0x165   : > { %924 = dma.done.wait (!%p806_p4), %s561_s4, 128  }
 0x166   : > { %926 = vsyncadd (!%p806_p4), %s561_s4, 4294967168  ;;  %p15_p7 = scmp.ge.s32.totalorder %s992_s18, 4   ;;  %s1152_s12 = smov %s933_s13 }
 0x167   : > { %s1153_s13 = smov %s937_s14  ;;  %s1154_s14 = smov %s1003_s21 }
 0x168   : > { %s1155_s15 = smov %s992_s18  ;;  %17 = sbr.rel (!%p15_p7) target bundleno = 4 (0x4), region = 82 }
 0x16f   :  { %566 = vsyncpa [#allocation3], 1 }
 0x170   :  { %568 = vsyncpa [#allocation3 + $0x1], 1 }
 0x171   :  { %569 = vsyncpa [#allocation4], 1 }
 0x172   :  { %571 = vsyncpa [#allocation4 + $0x1], 1 }

</bundles_post_ra>
